<compile_context>
chip_gen: v7x
topology: tpu7x:2x2x1
jax: 0.10.0
libtpu: 0.0.40
codegen_flags: <defaults>
</compile_context>

<pallas_src>
import functools

import jax
import jax.numpy as jnp
import numpy as np
from jax import lax
from jax.experimental import pallas as pl
from jax.experimental.pallas import tpu as pltpu

LANE = 128          # pad Cout to this many lanes (dense vst)
DEF_TM = 256        # M-tile rows (multiple of 8), per-review sweet spot
VMEM_LIMIT = 32 * 1024 * 1024


def _round_up(x, m):
    return ((x + m - 1) // m) * m


def _tiles(m):
    """Pick (padded M, tile rows) so M_pad % tm == 0 and tm % 8 == 0."""
    m_pad = _round_up(max(m, 8), 8)
    if m_pad > DEF_TM:
        return _round_up(m, DEF_TM), DEF_TM
    return m_pad, m_pad


# ----------------------------- Pallas kernels -----------------------------

def _conv_bias_act_kernel(p_ref, w_ref, b_ref, o_ref, *, negative_slope):
    """One M-tile of im2col conv: patches @ weights (MXU, f32 acc) + bias,
    optional LeakyReLU fused into the store (lane-dense, Cout padded to 128)."""
    acc = jnp.dot(p_ref[...], w_ref[...], preferred_element_type=jnp.float32)
    acc = acc + b_ref[...]                       # [1, C_pad] broadcast, f32 VPU
    if negative_slope is not None:
        acc = jnp.where(acc >= 0, acc, negative_slope * acc)
    o_ref[...] = acc


def _conv_bn_lrelu_kernel(p_ref, w_ref, gamma_ref, beta_ref, o_ref, *,
                          m_true, eps, negative_slope):
    """Fused conv + training-mode BatchNorm (batch stats) + LeakyReLU.

    The full conv output stays resident in VMEM (output block index constant
    across the M grid axis).  Each step writes one raw conv tile; the last
    step computes per-channel mean / biased var over the valid rows, folds
    them into scale/shift and applies affine + LeakyReLU in place.
    """
    i = pl.program_id(0)
    tm = p_ref.shape[0]
    row0 = pl.multiple_of(i * tm, 8)
    acc = jnp.dot(p_ref[...], w_ref[...], preferred_element_type=jnp.float32)
    o_ref[pl.ds(row0, tm), :] = acc

    @pl.when(i == pl.num_programs(0) - 1)
    def _finalize():
        y = o_ref[...]                                    # (M_pad, C_pad) f32
        m_pad, c_pad = y.shape
        rows = lax.broadcasted_iota(jnp.int32, (m_pad, c_pad), 0)
        valid = (rows < m_true).astype(jnp.float32)       # mask padded rows
        inv_m = 1.0 / m_true
        mean = jnp.sum(y * valid, axis=0, keepdims=True) * inv_m
        diff = (y - mean) * valid
        var = jnp.sum(diff * diff, axis=0, keepdims=True) * inv_m
        scale = gamma_ref[...] * lax.rsqrt(var + eps)
        shift = beta_ref[...] - mean * scale
        z = y * scale + shift
        o_ref[...] = jnp.where(z >= 0, z, negative_slope * z)


# ----------------------------- kernel wrappers -----------------------------

def _pad_operands(patches, w2d, m_pad, c_pad, compute_dtype):
    M, K = patches.shape
    Cout = w2d.shape[1]
    p = jnp.pad(patches.astype(compute_dtype), ((0, m_pad - M), (0, 0)))
    w = jnp.pad(w2d.astype(compute_dtype), ((0, 0), (0, c_pad - Cout)))
    return p, w


def pallas_conv(patches, w2d, bias, *, leaky, compute_dtype):
    """Conv (im2col matmul) + bias + optional LeakyReLU, tiled over M."""
    M, K = patches.shape
    Cout = w2d.shape[1]
    c_pad = _round_up(Cout, LANE)
    m_pad, tm = _tiles(M)
    p, w = _pad_operands(patches, w2d, m_pad, c_pad, compute_dtype)
    b = jnp.pad(bias.astype(jnp.float32), (0, c_pad - Cout)).reshape(1, c_pad)

    kernel = functools.partial(_conv_bias_act_kernel, negative_slope=leaky)
    out = pl.pallas_call(
        kernel,
        out_shape=jax.ShapeDtypeStruct((m_pad, c_pad), jnp.float32),
        grid=(m_pad // tm,),
        in_specs=[
            pl.BlockSpec((tm, K), lambda i: (i, 0)),
            pl.BlockSpec((K, c_pad), lambda i: (0, 0)),
            pl.BlockSpec((1, c_pad), lambda i: (0, 0)),
        ],
        out_specs=pl.BlockSpec((tm, c_pad), lambda i: (i, 0)),
        compiler_params=pltpu.CompilerParams(
            dimension_semantics=("parallel",),
            vmem_limit_bytes=VMEM_LIMIT),
    )(p, w, b)
    return out[:M, :Cout]


def pallas_conv_bn_lrelu(patches, w2d, gamma, beta, *, eps, compute_dtype,
                         negative_slope=0.2):
    """Fused conv + BatchNorm(batch stats) + LeakyReLU in one pallas_call."""
    M, K = patches.shape
    Cout = w2d.shape[1]
    c_pad = _round_up(Cout, LANE)
    m_pad, tm = _tiles(M)
    p, w = _pad_operands(patches, w2d, m_pad, c_pad, compute_dtype)
    g = jnp.pad(gamma.astype(jnp.float32), (0, c_pad - Cout),
                constant_values=1.0).reshape(1, c_pad)
    bt = jnp.pad(beta.astype(jnp.float32), (0, c_pad - Cout)).reshape(1, c_pad)

    kernel = functools.partial(_conv_bn_lrelu_kernel, m_true=M, eps=eps,
                               negative_slope=negative_slope)
    out = pl.pallas_call(
        kernel,
        out_shape=jax.ShapeDtypeStruct((m_pad, c_pad), jnp.float32),
        grid=(m_pad // tm,),
        in_specs=[
            pl.BlockSpec((tm, K), lambda i: (i, 0)),
            pl.BlockSpec((K, c_pad), lambda i: (0, 0)),
            pl.BlockSpec((1, c_pad), lambda i: (0, 0)),
            pl.BlockSpec((1, c_pad), lambda i: (0, 0)),
        ],
        # constant block index -> output stays resident in VMEM across the
        # reduction over M tiles (BN statistics need all rows).
        out_specs=pl.BlockSpec((m_pad, c_pad), lambda i: (0, 0)),
        compiler_params=pltpu.CompilerParams(
            dimension_semantics=("arbitrary",),
            vmem_limit_bytes=VMEM_LIMIT),
    )(p, w, g, bt)
    return out[:M, :Cout]


# ------------------------------- glue (JAX) --------------------------------

def im2col_nhwc(x, k, stride, pad):
    """x: [N,H,W,C] -> patches [N*Ho*Wo, k*k*C] ordered (kh, kw, ci)."""
    x = jnp.pad(x, ((0, 0), (pad, pad), (pad, pad), (0, 0)))
    N, H, W, C = x.shape
    Ho = (H - k) // stride + 1
    Wo = (W - k) // stride + 1
    cols = []
    for i in range(k):
        for j in range(k):
            cols.append(x[:, i:i + Ho * stride:stride, j:j + Wo * stride:stride, :])
    p = jnp.stack(cols, axis=3).reshape(N, Ho, Wo, k * k * C)
    return p.reshape(N * Ho * Wo, k * k * C), (N, Ho, Wo)


def discriminator_forward(x_nchw, params, *, bn_eps=1e-5,
                          compute_dtype=jnp.bfloat16):
    """Forward pass matching the PyTorch nn.Sequential (patch head)."""
    x = jnp.transpose(x_nchw, (0, 2, 3, 1)).astype(jnp.float32)  # NHWC
    for layer in params:
        w = layer["w"]                                # [Cout, Cin, kh, kw] OIHW
        Cout, Cin, kh, kw = w.shape
        patches, (N, Ho, Wo) = im2col_nhwc(x, kh, layer["stride"], 1)
        w2d = jnp.transpose(w, (2, 3, 1, 0)).reshape(kh * kw * Cin, Cout)
        if layer["bn"] is not None:
            gamma, beta = layer["bn"]
            y = pallas_conv_bn_lrelu(patches, w2d, gamma, beta, eps=bn_eps,
                                     compute_dtype=compute_dtype)
        else:
            bias = layer["b"] if layer["b"] is not None \
                else jnp.zeros((Cout,), jnp.float32)
            y = pallas_conv(patches, w2d, bias,
                            leaky=(0.2 if layer["act"] else None),
                            compute_dtype=compute_dtype)
        x = y.reshape(N, Ho, Wo, Cout)
    return jnp.transpose(x, (0, 3, 1, 2))             # back to NCHW


# --------------------------- deterministic params ---------------------------

def make_params(key, input_nc=3, ndf=8, n_layers=3):
    """Conv / BN params with the exact shapes the PyTorch __init__ produces."""
    params = []
    kit = iter(list(jax.random.split(key, 32)))

    def w_init(cout, cin):
        return 0.02 * jax.random.normal(next(kit), (cout, cin, 4, 4), jnp.float32)

    def b_init(cout):
        return 0.02 * jax.random.normal(next(kit), (cout,), jnp.float32)

    def bn_init(c):
        gamma = 1.0 + 0.1 * jax.random.normal(next(kit), (c,), jnp.float32)
        beta = 0.1 * jax.random.normal(next(kit), (c,), jnp.float32)
        return (gamma, beta)

    # layer 0: Conv(input_nc, ndf, 4, s=2, p=1) + LeakyReLU
    params.append(dict(w=w_init(ndf, input_nc), b=b_init(ndf), stride=2,
                       bn=None, act=True))
    nf_mult = 1
    for n in range(1, n_layers):                       # strided BN blocks
        nf_prev, nf_mult = nf_mult, min(2 ** n, 8)
        params.append(dict(w=w_init(ndf * nf_mult, ndf * nf_prev), b=None,
                           stride=2, bn=bn_init(ndf * nf_mult), act=True))
    nf_prev, nf_mult = nf_mult, min(2 ** n_layers, 8)  # stride-1 BN block
    params.append(dict(w=w_init(ndf * nf_mult, ndf * nf_prev), b=None,
                       stride=1, bn=bn_init(ndf * nf_mult), act=True))
    # patch head: Conv(ndf*nf_mult, 1, 4, s=1, p=1) with bias, no activation
    params.append(dict(w=w_init(1, ndf * nf_mult), b=b_init(1), stride=1,
                       bn=None, act=False))
    return params


# ------------------------------ pure-JAX ref --------------------------------

def reference_forward(x, params, bn_eps=1e-5):
    y = x.astype(jnp.float32)
    for layer in params:
        y = lax.conv_general_dilated(
            y, layer["w"], (layer["stride"], layer["stride"]), [(1, 1), (1, 1)],
            dimension_numbers=("NCHW", "OIHW", "NCHW"))
        if layer["b"] is not None:
            y = y + layer["b"].reshape(1, -1, 1, 1)
        if layer["bn"] is not None:
            gamma, beta = layer["bn"]
            mean = jnp.mean(y, axis=(0, 2, 3), keepdims=True)
            var = jnp.mean((y - mean) ** 2, axis=(0, 2, 3), keepdims=True)
            y = (y - mean) / jnp.sqrt(var + bn_eps)
            y = y * gamma.reshape(1, -1, 1, 1) + beta.reshape(1, -1, 1, 1)
        if layer["act"]:
            y = jnp.where(y >= 0, y, 0.2 * y)
    return y


# ---------------------------------- main ------------------------------------

if __name__ == "__main__":
    key = jax.random.PRNGKey(0)
    kx, kp = jax.random.split(key)

    # input (NCHW like PyTorch): batch=2, input_nc=3, 32x32 spatial
    x = jax.random.normal(kx, (2, 3, 32, 32), jnp.float32)
    params = make_params(kp, input_nc=3, ndf=8, n_layers=3)

    ref = jax.block_until_ready(reference_forward(x, params))

    # f32 operand path: tight structural check against the pure-JAX reference.
    out_f32 = jax.block_until_ready(
        discriminator_forward(x, params, compute_dtype=jnp.float32))
    assert out_f32.shape == ref.shape == (2, 1, 2, 2), (out_f32.shape, ref.shape)
    np.testing.assert_allclose(np.asarray(out_f32), np.asarray(ref),
                               rtol=1e-3, atol=1e-3)

    # bf16 MXU operand path (default: 2x MXU throughput, half operand traffic).
    # Tolerance sized for bf16 input rounding compounded over 5 conv layers
    # and BatchNorm re-normalization.
    out_bf16 = jax.block_until_ready(
        discriminator_forward(x, params, compute_dtype=jnp.bfloat16))
    assert out_bf16.shape == (2, 1, 2, 2)
    np.testing.assert_allclose(np.asarray(out_bf16), np.asarray(ref),
                               rtol=3e-2, atol=3e-2)

    print("KERNEL_OK")
</pallas_src>

<mosaic_0001>
module attributes {stable_mosaic.version = 11 : i64} {
  func.func @_conv_bias_act_kernel(%arg0: i32, %arg1: memref<256x48xf32, #tpu.memory_space<vmem>>, %arg2: memref<48x128xf32, #tpu.memory_space<vmem>>, %arg3: memref<1x128xf32, #tpu.memory_space<vmem>>, %arg4: memref<256x128xf32, #tpu.memory_space<vmem>>) attributes {dimension_semantics = [#tpu.dimension_semantics<parallel>], iteration_bounds = array<i64: 2>, scalar_prefetch = 0 : i64, scratch_operands = 0 : i64, tpu.core_type = #tpu.core_type<tc>, window_params = [{transform_indices = @transform_0, window_bounds = array<i64: 256, 48>}, {pipeline_mode = #tpu.pipeline_mode<synchronous>, transform_indices = @transform_1, window_bounds = array<i64: 48, 128>}, {pipeline_mode = #tpu.pipeline_mode<synchronous>, transform_indices = @transform_2, window_bounds = array<i64: 1, 128>}, {transform_indices = @transform_3, window_bounds = array<i64: 256, 128>}]} {
    %c0 = arith.constant 0 : index
    %c0_0 = arith.constant 0 : index
    %0 = vector.load %arg1[%c0, %c0_0] : memref<256x48xf32, #tpu.memory_space<vmem>>, vector<256x48xf32>
    %c0_1 = arith.constant 0 : index
    %c0_2 = arith.constant 0 : index
    %1 = vector.load %arg2[%c0_1, %c0_2] : memref<48x128xf32, #tpu.memory_space<vmem>>, vector<48x128xf32>
    %cst = arith.constant dense<0.000000e+00> : vector<256x128xf32>
    %2 = tpu.matmul %0, %1, %cst {dimension_numbers = #tpu.dot_dimension_numbers<[1], [0], [0], [1], [0, 0, 1, 1], [], []>} : vector<256x48xf32>, vector<48x128xf32>, vector<256x128xf32> -> vector<256x128xf32>
    %c0_3 = arith.constant 0 : index
    %c0_4 = arith.constant 0 : index
    %3 = vector.load %arg3[%c0_3, %c0_4] : memref<1x128xf32, #tpu.memory_space<vmem>>, vector<1x128xf32>
    %4 = vector.broadcast %3 : vector<1x128xf32> to vector<256x128xf32>
    %5 = arith.addf %2, %4 : vector<256x128xf32>
    %cst_5 = arith.constant 0.000000e+00 : f32
    %6 = vector.broadcast %cst_5 : f32 to vector<256x128xf32>
    %7 = arith.cmpf oge, %5, %6 : vector<256x128xf32>
    %cst_6 = arith.constant 2.000000e-01 : f32
    %8 = vector.broadcast %cst_6 : f32 to vector<256x128xf32>
    %9 = arith.mulf %8, %5 : vector<256x128xf32>
    %10 = arith.select %7, %5, %9 : vector<256x128xi1>, vector<256x128xf32>
    %c0_7 = arith.constant 0 : index
    %c0_8 = arith.constant 0 : index
    %11 = vector.load %arg4[%c0_7, %c0_8] : memref<256x128xf32, #tpu.memory_space<vmem>>, vector<256x128xf32>
    tpu.vector_store %arg4[%c0_7, %c0_8], %10 {strides = array<i32>} : memref<256x128xf32, #tpu.memory_space<vmem>>, vector<256x128xf32>,
    return
  }
  func.func @transform_0(%arg0: i32) -> (i32, i32) {
    %c0_i32 = arith.constant 0 : i32
    %c0_i32_0 = arith.constant 0 : i32
    return %arg0, %c0_i32 : i32, i32
  }
  func.func @transform_1(%arg0: i32) -> (i32, i32) {
    %c0_i32 = arith.constant 0 : i32
    %c0_i32_0 = arith.constant 0 : i32
    %c0_i32_1 = arith.constant 0 : i32
    return %c0_i32, %c0_i32_0 : i32, i32
  }
  func.func @transform_2(%arg0: i32) -> (i32, i32) {
    %c0_i32 = arith.constant 0 : i32
    %c0_i32_0 = arith.constant 0 : i32
    %c0_i32_1 = arith.constant 0 : i32
    return %c0_i32, %c0_i32_0 : i32, i32
  }
  func.func @transform_3(%arg0: i32) -> (i32, i32) {
    %c0_i32 = arith.constant 0 : i32
    %c0_i32_0 = arith.constant 0 : i32
    return %arg0, %c0_i32 : i32, i32
  }
}

</mosaic_0001>

<bundles_post_ra>
// kernel: tpu_custom_call.1
= control target key start
LH: loop header
LB: loop body
LE: loop exit
PB: predicated region body
PF: predicated region fallthrough
CT: control target
= control target key end

     0   :  { %8 = vsyncpa [#allocation3], 0  ;;  %s1295_s0 = inlined_call_operand.vmem [shape: f32[512,48], index: 0, kind: input, shape index: {}]   ;;  %s1296_s1 = inlined_call_operand.vmem [shape: f32[48,128], index: 1, kind: input, shape index: {}]   ;;  %s1297_s2 = inlined_call_operand.vmem [shape: f32[1,128], index: 2, kind: input, shape index: {}]   ;;  %s1298_s3 = inlined_call_operand.hbm [shape: f32[512,128], index: 3, kind: output, shape index: {}]  }
   0x1   :  { %10 = vsyncpa [#allocation3 + $0x1], 0  ;;  %s1033_s12 = smov 0   ;;  %s1035_s13 = smov 0  }
   0x2   :  { %s1037_s14 = smov 0   ;;  %s1039_s15 = smov 0  }
   0x3 LB: > { %s1054_s16 = sadd.s32 4294967295, %s1008_s15   ;;  %s743_s17 = sadd.s32 4294967294, %s1008_s15   ;;  %s1008_s15 = sphi %s1039_s15, %s1304_s15   ;;  %s1004_s14 = sphi %s1037_s14, %s1303_s14   ;;  %s1000_s13 = sphi %s1035_s13, %s1302_s13   ;;  %s996_s12 = sphi %s1033_s12, %s1301_s12  }
   0x4   : > { %s1058_s18 = sadd.s32 1, %s1008_s15   ;;  %s91_s19 = sadd.s32 1, %s1004_s14 }
   0x5   : > { %s88_s20 = ssub.s32 %s1008_s15, %s1058_s18  ;;  %p101_p0 = scmp.ne.s32.totalorder %s1004_s14, %s1000_s13 }
   0x6   : > { %p89_p1 = scmp.eq.s32.totalorder %s88_s20, 0  ;;  %p102_p2 = scmp.eq.s32.totalorder %s1054_s16, 1 }
   0x7   : > { %p107_p3 = scmp.ne.s32.totalorder %s1000_s13, %s996_s12  ;;  %p108_p4 = scmp.eq.s32.totalorder %s743_s17, 1 }
   0x8   : > { %s1069_s21 = scalar_select %p89_p1, %s1004_s14, %s91_s19  }
   0x9   : > { %p1071_p5 = por %p102_p2, %p101_p0  ;;  %p1075_p6 = por %p108_p4, %p107_p3 }
   0xa   : > { %p746_p7 = scmp.ge.s32.totalorder %s1008_s15, 1  ;;  %p141_p8 = scmp.lt.s32.totalorder %s1008_s15, 3 }
   0xc   : > { %p142_p9 = pnand %p746_p7, %p141_p8 }
   0xd   : > { %v204_v0 = vld [vmem:[%s1296_s1] sm:$0xff] (!%p142_p9)  ;;  %v205_v1 = vld [vmem:[%s1296_s1 + $0x8] sm:$0xff] (!%p142_p9)  ;;  %v206_v2 = vld [vmem:[%s1296_s1 + $0x10] sm:$0xff] (!%p142_p9)  ;;  %s748_s30 = sshll.u32 (!%p142_p9), %s1054_s16, 5  ;;  %vm217_vm0 = vcmask (!%p142_p9), 392192   ;;  %s162_s20 = sand.u32 (!%p142_p9), 1, %s1000_s13  }
   0xe   : > { %145 = sbr.rel (%p142_p9) target bundleno = 292 (0x124), region = 32  ;;  %v887_v3 = vpack.c.bf16 (!%p142_p9), %v205_v1, %v204_v0  ;;  %v207_v4 = vld [vmem:[%s1296_s1 + $0x18] sm:$0xff] (!%p142_p9)  ;;  %p166_p10 = scmp.lt.s32.totalorder (!%p142_p9), %s748_s30, 63  ;;  %v208_v6 = vld [vmem:[%s1296_s1 + $0x20] sm:$0xff] (!%p142_p9)  ;;  %v209_v7 = vld [vmem:[%s1296_s1 + $0x28] sm:$0xff] (!%p142_p9) }
   0xf   : > { %v891_v5 = vpack.c.bf16 (!%p142_p9), %v207_v4, %v206_v2  ;;  %v895_v8 = vpack.c.bf16 (!%p142_p9), %v209_v7, %v208_v6  ;;  %v1173_v41 = vld [vmem:[%s1297_s2] ss:$0 sm:$0xff] (!%p142_p9)  ;;  %s747_s26 = sshll.u32 (!%p142_p9), %s162_s20, 8  ;;  %s788_s28 = sshll.u32 (!%p142_p9), %s1054_s16, 12 }
  0x10   : > { %888 = vmatprep.subr.bf16.mxu0 (!%p142_p9), %v887_v3  ;;  %899 = vmatprep.subr.bf16.mxu1 (!%p142_p9), %v887_v3  ;;  %s1181_s27 = scalar_lea.vmem (!%p142_p9), [#allocation2], %s747_s26  ;;  %s1244_s4 = scalar_lea.hbm (!%p142_p9), %s1298_s3, %s788_s28 }
  0x11   : > { %890 = vmatpush3.bf16.msra.mxu0 (!%p142_p9), %v887_v3  ;;  %902 = vmatpush3.bf16.msra.mxu1 (!%p142_p9), %v887_v3  ;;  %s681_s29 = sshll.u32 (!%p142_p9), %s1181_s27, 4  ;;  %s1254_s5 = scalar_lea.sflag (!%p142_p9), [#allocation3], %s162_s20  ;;  %s1246_s29 = int_to_ptr.vmem [resolvable:$true] %s681_s29 }
  0x12   : > { %892 = vmatprep.subr.bf16.mxu0 (!%p142_p9), %v891_v5  ;;  %900 = vmatprep.subr.bf16.mxu1 (!%p142_p9), %v891_v5  ;;  %s946_s6 = scalar_lea.vmem (!%p142_p9), %s1246_s29, 4096  ;;  %s1010_s7 = smov (!%p142_p9), [#allocation2]  }
  0x13   : > { %p947_p11 = scmp.ne.s32.totalorder (!%p142_p9), %s1246_s29, %s946_s6  ;;  %s950_s8 = sshll.u32 (!%p142_p9), %s1010_s7, 4  ;;  %s951_s8 = int_to_ptr.vmem [resolvable:$false] %s950_s8 }
  0x14   : > { %s952_s9 = scalar_lea.vmem (!%p142_p9), %s951_s8, 8192  ;;  %p953_p0 = scmp.lt.s32.totalorder (!%p142_p9), %s1246_s29, %s951_s8 }
  0x15   : > { %s1306_s30 = smov (!%p166_p10, %s748_s30), 63  ;;  %894 = vmatpush3.bf16.msra.mxu0 %v891_v5  ;;  %903 = vmatpush3.bf16.msra.mxu1 %v891_v5  ;;  %p948_p12 = pnand %p947_p11, %p1071_p5 }
  0x16   : > { %s749_s10 = sshll.u32 %s1306_s30, 3  ;;  %896 = vmatprep.subr.bf16.mxu0 %v895_v8  ;;  %901 = vmatprep.subr.bf16.mxu1 %v895_v8  ;;  %p954_p1 = scmp.lt.s32.totalorder %s952_s9, %s946_s6 }
  0x17   : > { %s1103_s19 = scalar_lea.vmem %s1295_s0, %s749_s10  ;;  %p949_p13 = pneg %p948_p12 }
  0x18   : > { %v172_v9 = vld [vmem:[%s1103_s19] sm:$0xff]  ;;  %v173_v11 = vld [vmem:[%s1103_s19 + $0x8] sm:$0xff]  ;;  %v174_v13 = vld [vmem:[%s1103_s19 + $0x10] sm:$0xff]  ;;  %p955_p2 = por %p954_p1, %p953_p0 }
  0x19   : > { %v188_v10 = vld [vmem:[%s1103_s19 + $0x80] sm:$0xff]  ;;  %839 = vmatprep.mubr.msk.f32.mxu0 %vm217_vm0, %v172_v9  ;;  %898 = vmatpush3.bf16.msra.mxu0 %v895_v8  ;;  %v189_v12 = vld [vmem:[%s1103_s19 + $0x88] sm:$0xff]  ;;  %v190_v14 = vld [vmem:[%s1103_s19 + $0x90] sm:$0xff] }
  0x1a   : > { %863 = vmatprep.mubr.msk.f32.mxu1 %vm217_vm0, %v188_v10  ;;  %904 = vmatpush3.bf16.msra.mxu1 %v895_v8  ;;  %v175_v15 = vld [vmem:[%s1103_s19 + $0x18] sm:$0xff]  ;;  %v176_v17 = vld [vmem:[%s1103_s19 + $0x20] sm:$0xff]  ;;  %v177_v19 = vld [vmem:[%s1103_s19 + $0x28] sm:$0xff]  ;;  %p956_p3 = pnand %p955_p2, %p949_p13 }
  0x1b   : > { %v191_v16 = vld [vmem:[%s1103_s19 + $0x98] sm:$0xff]  ;;  %v192_v18 = vld [vmem:[%s1103_s19 + $0xa0] sm:$0xff]  ;;  %v193_v20 = vld [vmem:[%s1103_s19 + $0xa8] sm:$0xff] }
  0x1c   : > { %840 = vmatmul.mubr.msk.f32.vlgmr.msra.gmra.mrb[0].mxu0 %vm217_vm0, %v173_v11  ;;  %v178_v21 = vld [vmem:[%s1103_s19 + $0x30] sm:$0xff]  ;;  %v179_v23 = vld [vmem:[%s1103_s19 + $0x38] sm:$0xff]  ;;  %v180_v25 = vld [vmem:[%s1103_s19 + $0x40] sm:$0xff] }
  0x1d   : > { %864 = vmatmul.mubr.msk.f32.vlgmr.msra.gmra.mrb[0].mxu1 %vm217_vm0, %v189_v12  ;;  %842 = vmatprep.mubr.msk.f32.mxu0 %vm217_vm0, %v174_v13  ;;  %v194_v22 = vld [vmem:[%s1103_s19 + $0xb0] sm:$0xff]  ;;  %v195_v24 = vld [vmem:[%s1103_s19 + $0xb8] sm:$0xff]  ;;  %v196_v26 = vld [vmem:[%s1103_s19 + $0xc0] sm:$0xff] }
  0x1e   : > { %866 = vmatprep.mubr.msk.f32.mxu1 %vm217_vm0, %v190_v14  ;;  %v181_v27 = vld [vmem:[%s1103_s19 + $0x48] sm:$0xff]  ;;  %v182_v29 = vld [vmem:[%s1103_s19 + $0x50] sm:$0xff]  ;;  %v183_v31 = vld [vmem:[%s1103_s19 + $0x58] sm:$0xff] }
  0x1f   : > { %v197_v28 = vld [vmem:[%s1103_s19 + $0xc8] sm:$0xff]  ;;  %v198_v30 = vld [vmem:[%s1103_s19 + $0xd0] sm:$0xff]  ;;  %v199_v32 = vld [vmem:[%s1103_s19 + $0xd8] sm:$0xff] }
  0x20   : > { %843 = vmatmul.mubr.msk.f32.gmra.mrb[2].mxu0 %vm217_vm0, %v175_v15  ;;  %v184_v33 = vld [vmem:[%s1103_s19 + $0x60] sm:$0xff]  ;;  %v185_v35 = vld [vmem:[%s1103_s19 + $0x68] sm:$0xff]  ;;  %v186_v37 = vld [vmem:[%s1103_s19 + $0x70] sm:$0xff] }
  0x21   : > { %867 = vmatmul.mubr.msk.f32.gmra.mrb[2].mxu1 %vm217_vm0, %v191_v16  ;;  %845 = vmatprep.mubr.msk.f32.mxu0 %vm217_vm0, %v176_v17  ;;  %v200_v34 = vld [vmem:[%s1103_s19 + $0xe0] sm:$0xff]  ;;  %v201_v36 = vld [vmem:[%s1103_s19 + $0xe8] sm:$0xff]  ;;  %v202_v38 = vld [vmem:[%s1103_s19 + $0xf0] sm:$0xff] }
  0x22   : > { %869 = vmatprep.mubr.msk.f32.mxu1 %vm217_vm0, %v192_v18  ;;  %v187_v39 = vld [vmem:[%s1103_s19 + $0x78] sm:$0xff] }
  0x23   : > { %v203_v40 = vld [vmem:[%s1103_s19 + $0xf8] sm:$0xff] }
  0x24   : > { %846 = vmatmul.mubr.msk.f32.gmra.mrb[4].mxu0 %vm217_vm0, %v177_v19 }
  0x25   : > { %870 = vmatmul.mubr.msk.f32.gmra.mrb[4].mxu1 %vm217_vm0, %v193_v20  ;;  %848 = vmatprep.mubr.msk.f32.mxu0 %vm217_vm0, %v178_v21 }
  0x26   : > { %872 = vmatprep.mubr.msk.f32.mxu1 %vm217_vm0, %v194_v22 }
  0x28   : > { %849 = vmatmul.mubr.msk.f32.gmra.mrb[6].mxu0 %vm217_vm0, %v179_v23 }
  0x29   : > { %873 = vmatmul.mubr.msk.f32.gmra.mrb[6].mxu1 %vm217_vm0, %v195_v24  ;;  %851 = vmatprep.mubr.msk.f32.mxu0 %vm217_vm0, %v180_v25 }
  0x2a   : > { %875 = vmatprep.mubr.msk.f32.mxu1 %vm217_vm0, %v196_v26 }
  0x2c   : > { %852 = vmatmul.mubr.msk.f32.gmra.mrb[8].mxu0 %vm217_vm0, %v181_v27 }
  0x2d   : > { %876 = vmatmul.mubr.msk.f32.gmra.mrb[8].mxu1 %vm217_vm0, %v197_v28  ;;  %854 = vmatprep.mubr.msk.f32.mxu0 %vm217_vm0, %v182_v29 }
  0x2e   : > { %878 = vmatprep.mubr.msk.f32.mxu1 %vm217_vm0, %v198_v30 }
  0x30   : > { %855 = vmatmul.mubr.msk.f32.gmra.mrb[10].mxu0 %vm217_vm0, %v183_v31 }
  0x31   : > { %879 = vmatmul.mubr.msk.f32.gmra.mrb[10].mxu1 %vm217_vm0, %v199_v32  ;;  %857 = vmatprep.mubr.msk.f32.mxu0 %vm217_vm0, %v184_v33 }
  0x32   : > { %881 = vmatprep.mubr.msk.f32.mxu1 %vm217_vm0, %v200_v34 }
  0x34   : > { %858 = vmatmul.mubr.msk.f32.gmra.mrb[12].mxu0 %vm217_vm0, %v185_v35 }
  0x35   : > { %882 = vmatmul.mubr.msk.f32.gmra.mrb[12].mxu1 %vm217_vm0, %v201_v36  ;;  %860 = vmatprep.mubr.msk.f32.mxu0 %vm217_vm0, %v186_v37 }
  0x36   : > { %884 = vmatprep.mubr.msk.f32.mxu1 %vm217_vm0, %v202_v38 }
  0x38   : > { %861 = vmatmul.mubr.msk.f32.gmra.mrb[14].mxu0 %vm217_vm0, %v187_v39 }
  0x39   : > { %885 = vmatmul.mubr.msk.f32.gmra.mrb[14].mxu1 %vm217_vm0, %v203_v40 }
  0xef   : > { %v841_v42 = vpop.f32.mrb[0].mxu0 }
  0xf0   : > { %v865_v43 = vpop.f32.mrb[0].mxu1  ;;  %v386_v44 = vadd.f32 %v841_v42, %v1173_v41  ;;  %v380_v46 = vpop.f32.mrb[1].mxu0 }
  0xf1   : > { %v466_v45 = vadd.f32 %v865_v43, %v1173_v41  ;;  %v460_v47 = vpop.f32.mrb[1].mxu1  ;;  %v381_v48 = vadd.f32 %v1173_v41, %v380_v46 }
  0xf2   : > { %v461_v49 = vadd.f32 %v1173_v41, %v460_v47  ;;  %vm540_vm1 = vcmp.ge.f32.partialorder %v386_v44, 0.0  ;;  %v572_v50 = vmul.f32 0.2, %v386_v44 }
  0xf3   : > { %vm556_vm2 = vcmp.ge.f32.partialorder %v466_v45, 0.0  ;;  %v588_v51 = vmul.f32 0.2, %v466_v45  ;;  %vm539_vm3 = vcmp.ge.f32.partialorder %v381_v48, 0.0  ;;  %v571_v52 = vmul.f32 0.2, %v381_v48 }
  0xf4   : > { %vm555_vm4 = vcmp.ge.f32.partialorder %v461_v49, 0.0  ;;  %v587_v53 = vmul.f32 0.2, %v461_v49  ;;  %v604_v54 = vsel %vm540_vm1, %v386_v44, %v572_v50  ;;  %v844_v56 = vpop.f32.mrb[2].mxu0  ;;  %v868_v57 = vpop.f32.mrb[2].mxu1 }
  0xf5   : > { %v620_v55 = vsel %vm556_vm2, %v466_v45, %v588_v51  ;;  %636 = vst [vmem:[%s1181_s27 + $0x8] sm:$0xff] %v604_v54  ;;  %v603_v58 = vsel %vm539_vm3, %v381_v48, %v571_v52  ;;  %v396_v60 = vadd.f32 %v844_v56, %v1173_v41  ;;  %v476_v61 = vadd.f32 %v868_v57, %v1173_v41  ;;  %v390_v62 = vpop.f32.mrb[3].mxu0  ;;  %v470_v63 = vpop.f32.mrb[3].mxu1 }
  0xf6   : > { %652 = vst [vmem:[%s1181_s27 + $0x88] sm:$0xff] %v620_v55  ;;  %v619_v59 = vsel %vm555_vm4, %v461_v49, %v587_v53  ;;  %635 = vst [vmem:[%s1181_s27] sm:$0xff] %v603_v58  ;;  %v391_v0 = vadd.f32 %v1173_v41, %v390_v62  ;;  %v471_v1 = vadd.f32 %v1173_v41, %v470_v63 }
  0xf7   : > { %651 = vst [vmem:[%s1181_s27 + $0x80] sm:$0xff] %v619_v59  ;;  %vm542_vm5 = vcmp.ge.f32.partialorder %v396_v60, 0.0  ;;  %v574_v2 = vmul.f32 0.2, %v396_v60  ;;  %vm558_vm6 = vcmp.ge.f32.partialorder %v476_v61, 0.0  ;;  %v847_v8 = vpop.f32.mrb[4].mxu0 }
  0xf8   : > { %v590_v3 = vmul.f32 0.2, %v476_v61  ;;  %vm541_vm7 = vcmp.ge.f32.partialorder %v391_v0, 0.0  ;;  %v573_v4 = vmul.f32 0.2, %v391_v0  ;;  %vm557_vm8 = vcmp.ge.f32.partialorder %v471_v1, 0.0 }
  0xf9   : > { %v589_v5 = vmul.f32 0.2, %v471_v1  ;;  %v606_v6 = vsel %vm542_vm5, %v396_v60, %v574_v2  ;;  %v871_v9 = vpop.f32.mrb[4].mxu1  ;;  %v406_v12 = vadd.f32 %v847_v8, %v1173_v41  ;;  %v400_v14 = vpop.f32.mrb[5].mxu0 }
  0xfa   : > { %v622_v7 = vsel %vm558_vm6, %v476_v61, %v590_v3  ;;  %638 = vst [vmem:[%s1181_s27 + $0x18] sm:$0xff] %v606_v6  ;;  %v605_v10 = vsel %vm541_vm7, %v391_v0, %v573_v4  ;;  %v486_v13 = vadd.f32 %v871_v9, %v1173_v41  ;;  %v480_v15 = vpop.f32.mrb[5].mxu1  ;;  %v401_v16 = vadd.f32 %v1173_v41, %v400_v14 }
  0xfb   : > { %654 = vst [vmem:[%s1181_s27 + $0x98] sm:$0xff] %v622_v7  ;;  %v621_v11 = vsel %vm557_vm8, %v471_v1, %v589_v5  ;;  %637 = vst [vmem:[%s1181_s27 + $0x10] sm:$0xff] %v605_v10  ;;  %v481_v17 = vadd.f32 %v1173_v41, %v480_v15  ;;  %v850_v18 = vpop.f32.mrb[6].mxu0  ;;  %vm544_vm9 = vcmp.ge.f32.partialorder %v406_v12, 0.0  ;;  %v576_v20 = vmul.f32 0.2, %v406_v12 }
  0xfc   : > { %653 = vst [vmem:[%s1181_s27 + $0x90] sm:$0xff] %v621_v11  ;;  %v874_v19 = vpop.f32.mrb[6].mxu1  ;;  %vm560_vm10 = vcmp.ge.f32.partialorder %v486_v13, 0.0  ;;  %v592_v21 = vmul.f32 0.2, %v486_v13  ;;  %vm543_vm11 = vcmp.ge.f32.partialorder %v401_v16, 0.0  ;;  %v416_v26 = vadd.f32 %v850_v18, %v1173_v41 }
  0xfd   : > { %v575_v22 = vmul.f32 0.2, %v401_v16  ;;  %vm559_vm12 = vcmp.ge.f32.partialorder %v481_v17, 0.0  ;;  %v591_v23 = vmul.f32 0.2, %v481_v17  ;;  %v608_v24 = vsel %vm544_vm9, %v406_v12, %v576_v20  ;;  %v410_v28 = vpop.f32.mrb[7].mxu0 }
  0xfe   : > { %v624_v25 = vsel %vm560_vm10, %v486_v13, %v592_v21  ;;  %v496_v27 = vadd.f32 %v874_v19, %v1173_v41  ;;  %v490_v29 = vpop.f32.mrb[7].mxu1  ;;  %640 = vst [vmem:[%s1181_s27 + $0x28] sm:$0xff] %v608_v24  ;;  %v411_v32 = vadd.f32 %v1173_v41, %v410_v28  ;;  %vm546_vm13 = vcmp.ge.f32.partialorder %v416_v26, 0.0 }
  0xff   : > { %656 = vst [vmem:[%s1181_s27 + $0xa8] sm:$0xff] %v624_v25  ;;  %v607_v30 = vsel %vm543_vm11, %v401_v16, %v575_v22  ;;  %v623_v31 = vsel %vm559_vm12, %v481_v17, %v591_v23  ;;  %v491_v33 = vadd.f32 %v1173_v41, %v490_v29  ;;  %v853_v34 = vpop.f32.mrb[8].mxu0  ;;  %v578_v36 = vmul.f32 0.2, %v416_v26 }
 0x100   : > { %v877_v35 = vpop.f32.mrb[8].mxu1  ;;  %639 = vst [vmem:[%s1181_s27 + $0x20] sm:$0xff] %v607_v30  ;;  %655 = vst [vmem:[%s1181_s27 + $0xa0] sm:$0xff] %v623_v31  ;;  %vm562_vm14 = vcmp.ge.f32.partialorder %v496_v27, 0.0  ;;  %v594_v37 = vmul.f32 0.2, %v496_v27  ;;  %v426_v43 = vadd.f32 %v853_v34, %v1173_v41 }
 0x101   : > { %vm545_vm15 = vcmp.ge.f32.partialorder %v411_v32, 0.0  ;;  %v577_v38 = vmul.f32 0.2, %v411_v32  ;;  %vm561_vm0 = vcmp.ge.f32.partialorder %v491_v33, 0.0  ;;  %v593_v39 = vmul.f32 0.2, %v491_v33 }
 0x102   : > { %v610_v40 = vsel %vm546_vm13, %v416_v26, %v578_v36  ;;  %v626_v42 = vsel %vm562_vm14, %v496_v27, %v594_v37  ;;  %v506_v44 = vadd.f32 %v877_v35, %v1173_v41  ;;  %v420_v45 = vpop.f32.mrb[9].mxu0  ;;  %v500_v46 = vpop.f32.mrb[9].mxu1  ;;  %vm548_vm1 = vcmp.ge.f32.partialorder %v426_v43, 0.0 }
 0x103   : > { %642 = vst [vmem:[%s1181_s27 + $0x38] sm:$0xff] %v610_v40  ;;  %658 = vst [vmem:[%s1181_s27 + $0xb8] sm:$0xff] %v626_v42  ;;  %v609_v47 = vsel %vm545_vm15, %v411_v32, %v577_v38  ;;  %v625_v48 = vsel %vm561_vm0, %v491_v33, %v593_v39  ;;  %v421_v49 = vadd.f32 %v1173_v41, %v420_v45  ;;  %v856_v51 = vpop.f32.mrb[10].mxu0  ;;  %v580_v53 = vmul.f32 0.2, %v426_v43 }
 0x104   : > { %v501_v50 = vadd.f32 %v1173_v41, %v500_v46  ;;  %v880_v52 = vpop.f32.mrb[10].mxu1  ;;  %641 = vst [vmem:[%s1181_s27 + $0x30] sm:$0xff] %v609_v47  ;;  %657 = vst [vmem:[%s1181_s27 + $0xb0] sm:$0xff] %v625_v48  ;;  %vm564_vm2 = vcmp.ge.f32.partialorder %v506_v44, 0.0  ;;  %v596_v54 = vmul.f32 0.2, %v506_v44  ;;  %v436_v59 = vadd.f32 %v856_v51, %v1173_v41 }
 0x105   : > { %vm547_vm3 = vcmp.ge.f32.partialorder %v421_v49, 0.0  ;;  %v579_v55 = vmul.f32 0.2, %v421_v49  ;;  %v612_v57 = vsel %vm548_vm1, %v426_v43, %v580_v53  ;;  %v516_v60 = vadd.f32 %v880_v52, %v1173_v41  ;;  %v430_v61 = vpop.f32.mrb[11].mxu0  ;;  %v510_v62 = vpop.f32.mrb[11].mxu1 }
 0x106   : > { %vm563_vm4 = vcmp.ge.f32.partialorder %v501_v50, 0.0  ;;  %v595_v56 = vmul.f32 0.2, %v501_v50  ;;  %v628_v58 = vsel %vm564_vm2, %v506_v44, %v596_v54  ;;  %644 = vst [vmem:[%s1181_s27 + $0x48] sm:$0xff] %v612_v57  ;;  %v431_v1 = vadd.f32 %v1173_v41, %v430_v61 }
 0x107   : > { %660 = vst [vmem:[%s1181_s27 + $0xc8] sm:$0xff] %v628_v58  ;;  %v611_v63 = vsel %vm547_vm3, %v421_v49, %v579_v55  ;;  %v511_v2 = vadd.f32 %v1173_v41, %v510_v62  ;;  %v859_v3 = vpop.f32.mrb[12].mxu0  ;;  %vm550_vm5 = vcmp.ge.f32.partialorder %v436_v59, 0.0  ;;  %v582_v5 = vmul.f32 0.2, %v436_v59 }
 0x108   : > { %v627_v0 = vsel %vm563_vm4, %v501_v50, %v595_v56  ;;  %v883_v4 = vpop.f32.mrb[12].mxu1  ;;  %643 = vst [vmem:[%s1181_s27 + $0x40] sm:$0xff] %v611_v63  ;;  %vm566_vm6 = vcmp.ge.f32.partialorder %v516_v60, 0.0  ;;  %v598_v6 = vmul.f32 0.2, %v516_v60  ;;  %vm549_vm7 = vcmp.ge.f32.partialorder %v431_v1, 0.0 }
 0x109   : > { %659 = vst [vmem:[%s1181_s27 + $0xc0] sm:$0xff] %v627_v0  ;;  %v581_v7 = vmul.f32 0.2, %v431_v1  ;;  %vm565_vm8 = vcmp.ge.f32.partialorder %v511_v2, 0.0  ;;  %v597_v8 = vmul.f32 0.2, %v511_v2  ;;  %v614_v9 = vsel %vm550_vm5, %v436_v59, %v582_v5 }
 0x10a   : > { %v630_v10 = vsel %vm566_vm6, %v516_v60, %v598_v6  ;;  %v446_v11 = vadd.f32 %v859_v3, %v1173_v41  ;;  %v526_v12 = vadd.f32 %v883_v4, %v1173_v41  ;;  %v440_v13 = vpop.f32.mrb[13].mxu0  ;;  %v520_v14 = vpop.f32.mrb[13].mxu1  ;;  %646 = vst [vmem:[%s1181_s27 + $0x58] sm:$0xff] %v614_v9 }
 0x10b   : > { %662 = vst [vmem:[%s1181_s27 + $0xd8] sm:$0xff] %v630_v10  ;;  %v613_v15 = vsel %vm549_vm7, %v431_v1, %v581_v7  ;;  %v629_v16 = vsel %vm565_vm8, %v511_v2, %v597_v8  ;;  %v441_v17 = vadd.f32 %v1173_v41, %v440_v13  ;;  %v521_v18 = vadd.f32 %v1173_v41, %v520_v14  ;;  %v862_v19 = vpop.f32.mrb[14].mxu0 }
 0x10c   : > { %v886_v20 = vpop.f32.mrb[14].mxu1  ;;  %645 = vst [vmem:[%s1181_s27 + $0x50] sm:$0xff] %v613_v15  ;;  %661 = vst [vmem:[%s1181_s27 + $0xd0] sm:$0xff] %v629_v16  ;;  %vm552_vm9 = vcmp.ge.f32.partialorder %v446_v11, 0.0  ;;  %v584_v21 = vmul.f32 0.2, %v446_v11  ;;  %v456_v27 = vadd.f32 %v862_v19, %v1173_v41 }
 0x10d   : > { %vm568_vm10 = vcmp.ge.f32.partialorder %v526_v12, 0.0  ;;  %v600_v22 = vmul.f32 0.2, %v526_v12  ;;  %vm551_vm11 = vcmp.ge.f32.partialorder %v441_v17, 0.0  ;;  %v583_v23 = vmul.f32 0.2, %v441_v17 }
 0x10e   : > { %vm567_vm12 = vcmp.ge.f32.partialorder %v521_v18, 0.0  ;;  %v599_v24 = vmul.f32 0.2, %v521_v18  ;;  %v616_v25 = vsel %vm552_vm9, %v446_v11, %v584_v21  ;;  %v536_v28 = vadd.f32 %v886_v20, %v1173_v41  ;;  %v450_v29 = vpop.f32.mrb[15].mxu0  ;;  %v530_v30 = vpop.f32.mrb[15].mxu1 }
 0x10f   : > { %v632_v26 = vsel %vm568_vm10, %v526_v12, %v600_v22  ;;  %648 = vst [vmem:[%s1181_s27 + $0x68] sm:$0xff] %v616_v25  ;;  %v615_v31 = vsel %vm551_vm11, %v441_v17, %v583_v23  ;;  %v451_v33 = vadd.f32 %v1173_v41, %v450_v29  ;;  %v531_v34 = vadd.f32 %v1173_v41, %v530_v30 }
 0x110   : > { %664 = vst [vmem:[%s1181_s27 + $0xe8] sm:$0xff] %v632_v26  ;;  %v631_v32 = vsel %vm567_vm12, %v521_v18, %v599_v24  ;;  %647 = vst [vmem:[%s1181_s27 + $0x60] sm:$0xff] %v615_v31  ;;  %vm554_vm13 = vcmp.ge.f32.partialorder %v456_v27, 0.0  ;;  %v586_v35 = vmul.f32 0.2, %v456_v27  ;;  %vm570_vm14 = vcmp.ge.f32.partialorder %v536_v28, 0.0 }
 0x111   : > { %663 = vst [vmem:[%s1181_s27 + $0xe0] sm:$0xff] %v631_v32  ;;  %v602_v36 = vmul.f32 0.2, %v536_v28  ;;  %vm553_vm15 = vcmp.ge.f32.partialorder %v451_v33, 0.0  ;;  %v585_v37 = vmul.f32 0.2, %v451_v33 }
 0x112   : > { %vm569_vm0 = vcmp.ge.f32.partialorder %v531_v34, 0.0  ;;  %v601_v38 = vmul.f32 0.2, %v531_v34  ;;  %v618_v41 = vsel %vm554_vm13, %v456_v27, %v586_v35 }
 0x113   : > { %v634_v39 = vsel %vm570_vm14, %v536_v28, %v602_v36  ;;  %650 = vst [vmem:[%s1181_s27 + $0x78] sm:$0xff] %v618_v41  ;;  %v617_v40 = vsel %vm553_vm15, %v451_v33, %v585_v37 }
 0x114   : > { %666 = vst [vmem:[%s1181_s27 + $0xf8] sm:$0xff] %v634_v39  ;;  %v633_v42 = vsel %vm569_vm0, %v531_v34, %v601_v38  ;;  %649 = vst [vmem:[%s1181_s27 + $0x70] sm:$0xff] %v617_v40 }
 0x115   : > { %665 = vst [vmem:[%s1181_s27 + $0xf0] sm:$0xff] %v633_v42 }
 0x116   : > { %959 = shalt.err (!%p956_p3)
}
 0x117   : > { %s960_s10 = scalar_lea.hbm %s1244_s4, 4096  ;;  %s964_s19 = scalar_lea.hbm %s1298_s3, 8192 }
 0x118   : > { %p961_p4 = scmp.ne.s32.totalorder %s1244_s4, %s960_s10  ;;  %p965_p9 = scmp.lt.u32.totalorder %s1244_s4, %s1298_s3 }
 0x119   : > { %p966_p10 = scmp.lt.u32.totalorder %s964_s19, %s960_s10  ;;  %p968_p12 = scmp.lt.u32.totalorder %s960_s10, %s1244_s4 }
 0x11a   : > { %p962_p7 = pnand %p961_p4, %p1071_p5 }
 0x11b   : > { %p967_p11 = por %p966_p10, %p965_p9 }
 0x11c   : > { %p963_p8 = pneg %p962_p7 }
 0x11d   : > { %p969_p13 = por %p968_p12, %p967_p11 }
 0x11f   : > { %p970_p0 = pnand %p969_p13, %p963_p8 }
 0x121   : > { %973 = shalt.err (!%p970_p0)
}
 0x122   : > { %s1011_s25 = smov 128   ;;  %s1012_s26 = smov 8  }
 0x123   : > { %905 = dma.vmem_to_hbm [thread:$0]  (%p1071_p5), %s1246_s29, 4096, %s1244_s4, %s1254_s5, %s1011_s25, %s1011_s25, %s1012_s26  }
 0x124 PF: > { %p911_p1 = scmp.ge.s32.totalorder %s1008_s15, 2  ;;  %s696_s27 = sand.u32 1, %s996_s12  }
 0x125   : > { %s697_s28 = scalar_lea.sflag [#allocation3], %s696_s27 }
 0x126   : > { %p908_p2 = pnand %p911_p1, %p1075_p6 }
 0x128   : > { %991 = dma.done.wait (!%p908_p2), %s697_s28, 4096  }
 0x129   : > { %993 = vsyncadd (!%p908_p2), %s697_s28, 4294963200  ;;  %p13_p3 = scmp.ge.s32.totalorder %s1058_s18, 4   ;;  %s1301_s12 = smov %s1000_s13 }
 0x12a   : > { %s1302_s13 = smov %s1004_s14  ;;  %s1303_s14 = smov %s1069_s21 }
 0x12b   : > { %s1304_s15 = smov %s1058_s18  ;;  %15 = sbr.rel (!%p13_p3) target bundleno = 3 (0x3), region = 67 }
 0x132   :  { %702 = vsyncpa [#allocation3], 1 }
 0x133   :  { %704 = vsyncpa [#allocation3 + $0x1], 1 }

</bundles_post_ra>
